<compile_context>
chip_gen: v5e
topology: v5e:2x2
jax: 0.10.0
libtpu: 0.0.40
codegen_flags: <defaults>
</compile_context>

<pallas_src>
from functools import partial

import jax
import jax.numpy as jnp
from jax.experimental import pallas as pl
from jax.experimental.pallas import tpu as pltpu


def _align8(n):
    return (n + 7) // 8 * 8


def _packed_rows(mpad, H):
    """8-aligned row offsets of each tensor inside the packed-weights tile."""
    r_wih = 0                         # (mpad, 4H)  LSTM W_ih^T (g cols pre-scaled x2)
    r_whh = _align8(r_wih + mpad)     # (H, 4H)     LSTM W_hh^T (g cols pre-scaled x2)
    r_w1 = _align8(r_whh + H)         # (H, LW)     attention.0 weight^T (lanes >= H zero)
    r_wfc = _align8(r_w1 + H)         # (H, LW)     fc weight^T (lanes >= horizon zero)
    r_bias = _align8(r_wfc + H)       # 1 row:      b_ih + b_hh (g lanes pre-scaled x2)
    r_b1 = r_bias + 8                 # 1 row:      b_att1
    r_w2 = r_b1 + 8                   # 1 row:      attention.2 weight as a row
    r_bfc = r_w2 + 8                  # 1 row:      b_fc
    r_total = r_bfc + 8
    return r_wih, r_whh, r_w1, r_wfc, r_bias, r_b1, r_w2, r_bfc, r_total


def attention_lstm_kernel(x_ref, w_ref, out_ref, *, hidden_dim, batch):
    # x_ref : (T*B, mpad)  time-major flattened input (feature dim zero-padded)
    # w_ref : (rows, LW)   packed f32 weights (single DMA)
    # out_ref: (B, LW)     lane-padded output (first `horizon` lanes are real)
    H, B = hidden_dim, batch
    TB, MP = x_ref.shape
    T = TB // B

    r_wih, r_whh, r_w1, r_wfc, r_bias, r_b1, r_w2, r_bfc, _ = _packed_rows(MP, H)
    bf16 = jnp.bfloat16

    # --- LSTM weights: load once, cast matmul operands to bf16 (hoisted, one-time) ---
    w_ih = w_ref[r_wih:r_wih + MP, :].astype(bf16)    # (MP, LW) rows >= m are zero
    w_hh = w_ref[r_whh:r_whh + H, :].astype(bf16)     # (H, LW)
    bias = w_ref[r_bias:r_bias + 1, :]                # (1, LW) f32, b_ih + b_hh

    # --- hoisted input projection: one MXU call for all T*B rows ---
    xproj = jnp.dot(x_ref[...].astype(bf16), w_ih,
                    preferred_element_type=jnp.float32) + bias      # (T*B, LW) f32

    # --- LSTM recurrence (PyTorch gate order i,f,g,o), fully unrolled; h/c in vregs ---
    # g-gate lanes were pre-scaled by 2 at pack time, so ONE sigmoid covers all gates
    # and tanh(g) = 2*sigmoid(2g) - 1 is reconstructed with cheap VPU ops.
    h = jnp.zeros((B, H), jnp.float32)
    c = jnp.zeros((B, H), jnp.float32)
    h_steps = []
    for t in range(T):                                 # static trip count -> unrolled
        gates = xproj[t * B:(t + 1) * B, :] + jnp.dot(
            h.astype(bf16), w_hh, preferred_element_type=jnp.float32)   # (B, LW)
        sg = jax.nn.sigmoid(gates)                     # single EUP pass per step
        i_g = sg[:, 0 * H:1 * H]
        f_g = sg[:, 1 * H:2 * H]
        g_g = 2.0 * sg[:, 2 * H:3 * H] - 1.0           # tanh(preact_g) via VPU
        o_g = sg[:, 3 * H:4 * H]
        c = f_g * c + i_g * g_g
        h = o_g * jnp.tanh(c)                          # only remaining EUP tanh
        h_steps.append(h)                              # stays in vregs (no VMEM store)

    # --- all hidden states, built in-register with a single concatenate ---
    hs = jnp.concatenate(h_steps, axis=0)              # (T*B, H) f32

    # --- attention / fc weights (loaded after the loop; each row 8-aligned) ---
    w1 = w_ref[r_w1:r_w1 + H, :].astype(bf16)          # (H, LW)  lanes >= H zero
    b1 = w_ref[r_b1:r_b1 + 1, :]                       # (1, LW)
    w2r = w_ref[r_w2:r_w2 + 1, :]                      # (1, LW)  attention.2 weight row
    wfc = w_ref[r_wfc:r_wfc + H, :].astype(bf16)       # (H, LW)  lanes >= horizon zero
    bfc = w_ref[r_bfc:r_bfc + 1, :]                    # (1, LW)

    # --- attention over time, flattened (T*B, H) layout ---
    pre = jnp.tanh(jnp.dot(hs.astype(bf16), w1,
                           preferred_element_type=jnp.float32) + b1)   # (T*B, LW)
    # Second Linear has out_features=1: VPU multiply + lane reduce instead of an N=1
    # matmul.  (b_att2 is constant over time, cancels in the softmax -> omitted.)
    s = jnp.sum(pre * w2r, axis=1, keepdims=True)                       # (T*B, 1)
    s3 = s.reshape(T, B, 1)                                             # minor dim kept
    e3 = jnp.exp(s3 - jnp.max(s3, axis=0, keepdims=True))               # (T, B, 1)
    denom = jnp.sum(e3, axis=0)                                         # (B, 1)
    weighted = hs * e3.reshape(TB, 1)                                   # (T*B, H)
    context = jnp.sum(weighted.reshape(T, B, H), axis=0) / denom        # (B, H)

    # --- dropout (eval mode = identity) + fc + sigmoid output ---
    out = jnp.dot(context.astype(bf16), wfc,
                  preferred_element_type=jnp.float32) + bfc             # (B, LW)
    out_ref[...] = jax.nn.sigmoid(out)   # lanes >= horizon = sigmoid(0); wrapper slices


def pack_params(params, m, hidden_dim, horizon):
    """One-time packing of all weights/biases into a single lane-dense f32 tile.

    Called once at parameter-prepare time (NOT per forward call).  The g-gate columns
    of W_ih / W_hh / bias are pre-scaled by 2 so the kernel needs only one sigmoid per
    recurrence step (tanh(g) = 2*sigmoid(2g) - 1).
    """
    H = hidden_dim
    LW = max(4 * H, 128)
    mpad = _align8(m)
    r_wih, r_whh, r_w1, r_wfc, r_bias, r_b1, r_w2, r_bfc, r_total = _packed_rows(mpad, H)

    gscale = jnp.ones((4 * H,), jnp.float32).at[2 * H:3 * H].set(2.0)

    W = jnp.zeros((r_total, LW), jnp.float32)
    W = W.at[r_wih:r_wih + m, :4 * H].set(params['w_ih'].T.astype(jnp.float32) * gscale)
    W = W.at[r_whh:r_whh + H, :4 * H].set(params['w_hh'].T.astype(jnp.float32) * gscale)
    W = W.at[r_bias, :4 * H].set(
        (params['b_ih'] + params['b_hh']).astype(jnp.float32) * gscale)
    W = W.at[r_w1:r_w1 + H, :H].set(params['w_att1'].T.astype(jnp.float32))
    W = W.at[r_b1, :H].set(params['b_att1'].astype(jnp.float32))
    W = W.at[r_w2, :H].set(params['w_att2'][0].astype(jnp.float32))
    W = W.at[r_wfc:r_wfc + H, :horizon].set(params['w_fc'].T.astype(jnp.float32))
    W = W.at[r_bfc, :horizon].set(params['b_fc'].astype(jnp.float32))
    return W


@partial(jax.jit, static_argnames=("hidden_dim", "horizon"))
def attention_lstm_forward(x, w_packed, *, hidden_dim, horizon):
    """x: (B, T, m) float32, w_packed: output of pack_params -> (B, horizon) float32."""
    B, T, m = x.shape
    H = hidden_dim
    LW = w_packed.shape[1]
    mpad = _align8(m)

    # time-major flattened input, feature dim zero-padded (padded cols hit zero W rows)
    x_flat = jnp.transpose(x, (1, 0, 2)).reshape(T * B, m).astype(jnp.float32)
    x_flat = jnp.pad(x_flat, ((0, 0), (0, mpad - m)))

    vmem = pl.BlockSpec(memory_space=pltpu.MemorySpace.VMEM)
    out_pad = pl.pallas_call(
        partial(attention_lstm_kernel, hidden_dim=H, batch=B),
        out_shape=jax.ShapeDtypeStruct((B, LW), jnp.float32),
        in_specs=[vmem, vmem],
        out_specs=vmem,
    )(x_flat, w_packed)
    return out_pad[:, :horizon]


def reference_forward(x, params):
    """Pure-JAX (non-Pallas) reference with full-precision matmuls."""
    B, T, m = x.shape
    H = params['w_hh'].shape[1]
    hp = jax.lax.Precision.HIGHEST

    def mm(a, b):
        return jnp.dot(a, b, precision=hp)

    h = jnp.zeros((B, H), jnp.float32)
    c = jnp.zeros((B, H), jnp.float32)
    hs = []
    for t in range(T):
        g = (mm(x[:, t, :], params['w_ih'].T) + mm(h, params['w_hh'].T)
             + params['b_ih'] + params['b_hh'])
        i = jax.nn.sigmoid(g[:, 0 * H:1 * H])
        f = jax.nn.sigmoid(g[:, 1 * H:2 * H])
        gg = jnp.tanh(g[:, 2 * H:3 * H])
        o = jax.nn.sigmoid(g[:, 3 * H:4 * H])
        c = f * c + i * gg
        h = o * jnp.tanh(c)
        hs.append(h)
    hs = jnp.stack(hs, axis=1)                                         # (B, T, H)
    att = mm(jnp.tanh(mm(hs, params['w_att1'].T) + params['b_att1']),
             params['w_att2'].T) + params['b_att2']                    # (B, T, 1)
    att = jax.nn.softmax(att, axis=1)
    ctx = jnp.sum(hs * att, axis=1)                                    # (B, H)
    out = mm(ctx, params['w_fc'].T) + params['b_fc']
    return jax.nn.sigmoid(out)


def init_params(key, m, hidden_dim, horizon):
    """Deterministic uniform(-1/sqrt(H), 1/sqrt(H)) init (PyTorch-style)."""
    H = hidden_dim
    bound = 1.0 / jnp.sqrt(jnp.float32(H))
    keys = jax.random.split(key, 10)

    def u(k, shape):
        return jax.random.uniform(k, shape, jnp.float32, -bound, bound)

    return {
        'w_ih': u(keys[0], (4 * H, m)),
        'w_hh': u(keys[1], (4 * H, H)),
        'b_ih': u(keys[2], (4 * H,)),
        'b_hh': u(keys[3], (4 * H,)),
        'w_att1': u(keys[4], (H, H)),
        'b_att1': u(keys[5], (H,)),
        'w_att2': u(keys[6], (1, H)),
        'b_att2': u(keys[7], (1,)),
        'w_fc': u(keys[8], (horizon, H)),
        'b_fc': u(keys[9], (horizon,)),
    }


if __name__ == "__main__":
    B, T, m = 2, 8, 4          # batch, window (args.window), features (data.m)
    H, horizon = 32, 4         # args.hidRNN, args.horizon

    key = jax.random.PRNGKey(0)
    kx, kp = jax.random.split(key)
    x = jax.random.normal(kx, (B, T, m), dtype=jnp.float32)
    params = init_params(kp, m, H, horizon)

    # One-time weight packing (hoisted out of the forward/hot path).
    w_packed = jax.block_until_ready(pack_params(params, m, H, horizon))

    out = jax.block_until_ready(
        attention_lstm_forward(x, w_packed, hidden_dim=H, horizon=horizon))
    ref = jax.block_until_ready(reference_forward(x, params))

    assert out.shape == (B, horizon)
    assert bool(jnp.all(jnp.isfinite(out)))
    # bf16 MXU operands vs an f32 HIGHEST-precision reference: 1e-2 tolerance
    # (outputs are sigmoid-compressed into (0,1); observed error is well below this).
    assert bool(jnp.allclose(out, ref, atol=1e-2, rtol=1e-2)), (out, ref)
    print("KERNEL_OK")
</pallas_src>

<mosaic_0001>
module attributes {stable_mosaic.version = 11 : i64} {
  func.func @attention_lstm_kernel(%arg0: memref<16x8xf32, #tpu.memory_space<vmem>>, %arg1: memref<136x128xf32, #tpu.memory_space<vmem>>, %arg2: memref<2x128xf32, #tpu.memory_space<vmem>>) attributes {dimension_semantics = [], scalar_prefetch = 0 : i64, scratch_operands = 0 : i64, tpu.core_type = #tpu.core_type<tc>} {
    %c0 = arith.constant 0 : index
    %c0_0 = arith.constant 0 : index
    %0 = vector.load %arg1[%c0, %c0_0] : memref<136x128xf32, #tpu.memory_space<vmem>>, vector<8x128xf32>
    %1 = arith.truncf %0 : vector<8x128xf32> to vector<8x128xbf16>
    %c8 = arith.constant 8 : index
    %c0_1 = arith.constant 0 : index
    %2 = vector.load %arg1[%c8, %c0_1] : memref<136x128xf32, #tpu.memory_space<vmem>>, vector<32x128xf32>
    %3 = arith.truncf %2 : vector<32x128xf32> to vector<32x128xbf16>
    %c104 = arith.constant 104 : index
    %c0_2 = arith.constant 0 : index
    %4 = vector.load %arg1[%c104, %c0_2] : memref<136x128xf32, #tpu.memory_space<vmem>>, vector<1x128xf32>
    %c0_3 = arith.constant 0 : index
    %c0_4 = arith.constant 0 : index
    %5 = vector.load %arg0[%c0_3, %c0_4] : memref<16x8xf32, #tpu.memory_space<vmem>>, vector<16x8xf32>
    %6 = arith.truncf %5 : vector<16x8xf32> to vector<16x8xbf16>
    %cst = arith.constant dense<0.000000e+00> : vector<16x128xf32>
    %7 = tpu.matmul %6, %1, %cst {dimension_numbers = #tpu.dot_dimension_numbers<[1], [0], [0], [1], [0, 0, 1, 1], [], []>} : vector<16x8xbf16>, vector<8x128xbf16>, vector<16x128xf32> -> vector<16x128xf32>
    %8 = vector.broadcast %4 : vector<1x128xf32> to vector<16x128xf32>
    %9 = arith.addf %7, %8 : vector<16x128xf32>
    %cst_5 = arith.constant 0.000000e+00 : f32
    %10 = vector.broadcast %cst_5 : f32 to vector<2x32xf32>
    %cst_6 = arith.constant 0.000000e+00 : f32
    %11 = vector.broadcast %cst_6 : f32 to vector<2x32xf32>
    %12 = vector.extract_strided_slice %9 {offsets = [0, 0], sizes = [2, 128], strides = [1, 1]} : vector<16x128xf32> to vector<2x128xf32>
    %13 = arith.truncf %10 : vector<2x32xf32> to vector<2x32xbf16>
    %cst_7 = arith.constant dense<0.000000e+00> : vector<2x128xf32>
    %14 = tpu.matmul %13, %3, %cst_7 {dimension_numbers = #tpu.dot_dimension_numbers<[1], [0], [0], [1], [0, 0, 1, 1], [], []>} : vector<2x32xbf16>, vector<32x128xbf16>, vector<2x128xf32> -> vector<2x128xf32>
    %15 = arith.addf %12, %14 : vector<2x128xf32>
    %16 = arith.negf %15 : vector<2x128xf32>
    %17 = math.exp %16 : vector<2x128xf32>
    %cst_8 = arith.constant 1.000000e+00 : f32
    %18 = vector.broadcast %cst_8 : f32 to vector<2x128xf32>
    %19 = arith.addf %18, %17 : vector<2x128xf32>
    %20 = arith.divf %18, %19 : vector<2x128xf32>
    %21 = vector.extract_strided_slice %20 {offsets = [0, 0], sizes = [2, 32], strides = [1, 1]} : vector<2x128xf32> to vector<2x32xf32>
    %22 = vector.extract_strided_slice %20 {offsets = [0, 32], sizes = [2, 32], strides = [1, 1]} : vector<2x128xf32> to vector<2x32xf32>
    %23 = vector.extract_strided_slice %20 {offsets = [0, 64], sizes = [2, 32], strides = [1, 1]} : vector<2x128xf32> to vector<2x32xf32>
    %cst_9 = arith.constant 2.000000e+00 : f32
    %24 = vector.broadcast %cst_9 : f32 to vector<2x32xf32>
    %25 = arith.mulf %24, %23 : vector<2x32xf32>
    %cst_10 = arith.constant 1.000000e+00 : f32
    %26 = vector.broadcast %cst_10 : f32 to vector<2x32xf32>
    %27 = arith.subf %25, %26 : vector<2x32xf32>
    %28 = vector.extract_strided_slice %20 {offsets = [0, 96], sizes = [2, 32], strides = [1, 1]} : vector<2x128xf32> to vector<2x32xf32>
    %29 = arith.mulf %22, %11 : vector<2x32xf32>
    %30 = arith.mulf %21, %27 : vector<2x32xf32>
    %31 = arith.addf %29, %30 : vector<2x32xf32>
    %32 = math.tanh %31 : vector<2x32xf32>
    %33 = arith.mulf %28, %32 : vector<2x32xf32>
    %34 = vector.extract_strided_slice %9 {offsets = [2, 0], sizes = [2, 128], strides = [1, 1]} : vector<16x128xf32> to vector<2x128xf32>
    %35 = arith.truncf %33 : vector<2x32xf32> to vector<2x32xbf16>
    %cst_11 = arith.constant dense<0.000000e+00> : vector<2x128xf32>
    %36 = tpu.matmul %35, %3, %cst_11 {dimension_numbers = #tpu.dot_dimension_numbers<[1], [0], [0], [1], [0, 0, 1, 1], [], []>} : vector<2x32xbf16>, vector<32x128xbf16>, vector<2x128xf32> -> vector<2x128xf32>
    %37 = arith.addf %34, %36 : vector<2x128xf32>
    %38 = arith.negf %37 : vector<2x128xf32>
    %39 = math.exp %38 : vector<2x128xf32>
    %cst_12 = arith.constant 1.000000e+00 : f32
    %40 = vector.broadcast %cst_12 : f32 to vector<2x128xf32>
    %41 = arith.addf %40, %39 : vector<2x128xf32>
    %42 = arith.divf %40, %41 : vector<2x128xf32>
    %43 = vector.extract_strided_slice %42 {offsets = [0, 0], sizes = [2, 32], strides = [1, 1]} : vector<2x128xf32> to vector<2x32xf32>
    %44 = vector.extract_strided_slice %42 {offsets = [0, 32], sizes = [2, 32], strides = [1, 1]} : vector<2x128xf32> to vector<2x32xf32>
    %45 = vector.extract_strided_slice %42 {offsets = [0, 64], sizes = [2, 32], strides = [1, 1]} : vector<2x128xf32> to vector<2x32xf32>
    %cst_13 = arith.constant 2.000000e+00 : f32
    %46 = vector.broadcast %cst_13 : f32 to vector<2x32xf32>
    %47 = arith.mulf %46, %45 : vector<2x32xf32>
    %cst_14 = arith.constant 1.000000e+00 : f32
    %48 = vector.broadcast %cst_14 : f32 to vector<2x32xf32>
    %49 = arith.subf %47, %48 : vector<2x32xf32>
    %50 = vector.extract_strided_slice %42 {offsets = [0, 96], sizes = [2, 32], strides = [1, 1]} : vector<2x128xf32> to vector<2x32xf32>
    %51 = arith.mulf %44, %31 : vector<2x32xf32>
    %52 = arith.mulf %43, %49 : vector<2x32xf32>
    %53 = arith.addf %51, %52 : vector<2x32xf32>
    %54 = math.tanh %53 : vector<2x32xf32>
    %55 = arith.mulf %50, %54 : vector<2x32xf32>
    %56 = vector.extract_strided_slice %9 {offsets = [4, 0], sizes = [2, 128], strides = [1, 1]} : vector<16x128xf32> to vector<2x128xf32>
    %57 = arith.truncf %55 : vector<2x32xf32> to vector<2x32xbf16>
    %cst_15 = arith.constant dense<0.000000e+00> : vector<2x128xf32>
    %58 = tpu.matmul %57, %3, %cst_15 {dimension_numbers = #tpu.dot_dimension_numbers<[1], [0], [0], [1], [0, 0, 1, 1], [], []>} : vector<2x32xbf16>, vector<32x128xbf16>, vector<2x128xf32> -> vector<2x128xf32>
    %59 = arith.addf %56, %58 : vector<2x128xf32>
    %60 = arith.negf %59 : vector<2x128xf32>
    %61 = math.exp %60 : vector<2x128xf32>
    %cst_16 = arith.constant 1.000000e+00 : f32
    %62 = vector.broadcast %cst_16 : f32 to vector<2x128xf32>
    %63 = arith.addf %62, %61 : vector<2x128xf32>
    %64 = arith.divf %62, %63 : vector<2x128xf32>
    %65 = vector.extract_strided_slice %64 {offsets = [0, 0], sizes = [2, 32], strides = [1, 1]} : vector<2x128xf32> to vector<2x32xf32>
    %66 = vector.extract_strided_slice %64 {offsets = [0, 32], sizes = [2, 32], strides = [1, 1]} : vector<2x128xf32> to vector<2x32xf32>
    %67 = vector.extract_strided_slice %64 {offsets = [0, 64], sizes = [2, 32], strides = [1, 1]} : vector<2x128xf32> to vector<2x32xf32>
    %cst_17 = arith.constant 2.000000e+00 : f32
    %68 = vector.broadcast %cst_17 : f32 to vector<2x32xf32>
    %69 = arith.mulf %68, %67 : vector<2x32xf32>
    %cst_18 = arith.constant 1.000000e+00 : f32
    %70 = vector.broadcast %cst_18 : f32 to vector<2x32xf32>
    %71 = arith.subf %69, %70 : vector<2x32xf32>
    %72 = vector.extract_strided_slice %64 {offsets = [0, 96], sizes = [2, 32], strides = [1, 1]} : vector<2x128xf32> to vector<2x32xf32>
    %73 = arith.mulf %66, %53 : vector<2x32xf32>
    %74 = arith.mulf %65, %71 : vector<2x32xf32>
    %75 = arith.addf %73, %74 : vector<2x32xf32>
    %76 = math.tanh %75 : vector<2x32xf32>
    %77 = arith.mulf %72, %76 : vector<2x32xf32>
    %78 = vector.extract_strided_slice %9 {offsets = [6, 0], sizes = [2, 128], strides = [1, 1]} : vector<16x128xf32> to vector<2x128xf32>
    %79 = arith.truncf %77 : vector<2x32xf32> to vector<2x32xbf16>
    %cst_19 = arith.constant dense<0.000000e+00> : vector<2x128xf32>
    %80 = tpu.matmul %79, %3, %cst_19 {dimension_numbers = #tpu.dot_dimension_numbers<[1], [0], [0], [1], [0, 0, 1, 1], [], []>} : vector<2x32xbf16>, vector<32x128xbf16>, vector<2x128xf32> -> vector<2x128xf32>
    %81 = arith.addf %78, %80 : vector<2x128xf32>
    %82 = arith.negf %81 : vector<2x128xf32>
    %83 = math.exp %82 : vector<2x128xf32>
    %cst_20 = arith.constant 1.000000e+00 : f32
    %84 = vector.broadcast %cst_20 : f32 to vector<2x128xf32>
    %85 = arith.addf %84, %83 : vector<2x128xf32>
    %86 = arith.divf %84, %85 : vector<2x128xf32>
    %87 = vector.extract_strided_slice %86 {offsets = [0, 0], sizes = [2, 32], strides = [1, 1]} : vector<2x128xf32> to vector<2x32xf32>
    %88 = vector.extract_strided_slice %86 {offsets = [0, 32], sizes = [2, 32], strides = [1, 1]} : vector<2x128xf32> to vector<2x32xf32>
    %89 = vector.extract_strided_slice %86 {offsets = [0, 64], sizes = [2, 32], strides = [1, 1]} : vector<2x128xf32> to vector<2x32xf32>
    %cst_21 = arith.constant 2.000000e+00 : f32
    %90 = vector.broadcast %cst_21 : f32 to vector<2x32xf32>
    %91 = arith.mulf %90, %89 : vector<2x32xf32>
    %cst_22 = arith.constant 1.000000e+00 : f32
    %92 = vector.broadcast %cst_22 : f32 to vector<2x32xf32>
    %93 = arith.subf %91, %92 : vector<2x32xf32>
    %94 = vector.extract_strided_slice %86 {offsets = [0, 96], sizes = [2, 32], strides = [1, 1]} : vector<2x128xf32> to vector<2x32xf32>
    %95 = arith.mulf %88, %75 : vector<2x32xf32>
    %96 = arith.mulf %87, %93 : vector<2x32xf32>
    %97 = arith.addf %95, %96 : vector<2x32xf32>
    %98 = math.tanh %97 : vector<2x32xf32>
    %99 = arith.mulf %94, %98 : vector<2x32xf32>
    %100 = vector.extract_strided_slice %9 {offsets = [8, 0], sizes = [2, 128], strides = [1, 1]} : vector<16x128xf32> to vector<2x128xf32>
    %101 = arith.truncf %99 : vector<2x32xf32> to vector<2x32xbf16>
    %cst_23 = arith.constant dense<0.000000e+00> : vector<2x128xf32>
    %102 = tpu.matmul %101, %3, %cst_23 {dimension_numbers = #tpu.dot_dimension_numbers<[1], [0], [0], [1], [0, 0, 1, 1], [], []>} : vector<2x32xbf16>, vector<32x128xbf16>, vector<2x128xf32> -> vector<2x128xf32>
    %103 = arith.addf %100, %102 : vector<2x128xf32>
    %104 = arith.negf %103 : vector<2x128xf32>
    %105 = math.exp %104 : vector<2x128xf32>
    %cst_24 = arith.constant 1.000000e+00 : f32
    %106 = vector.broadcast %cst_24 : f32 to vector<2x128xf32>
    %107 = arith.addf %106, %105 : vector<2x128xf32>
    %108 = arith.divf %106, %107 : vector<2x128xf32>
    %109 = vector.extract_strided_slice %108 {offsets = [0, 0], sizes = [2, 32], strides = [1, 1]} : vector<2x128xf32> to vector<2x32xf32>
    %110 = vector.extract_strided_slice %108 {offsets = [0, 32], sizes = [2, 32], strides = [1, 1]} : vector<2x128xf32> to vector<2x32xf32>
    %111 = vector.extract_strided_slice %108 {offsets = [0, 64], sizes = [2, 32], strides = [1, 1]} : vector<2x128xf32> to vector<2x32xf32>
    %cst_25 = arith.constant 2.000000e+00 : f32
    %112 = vector.broadcast %cst_25 : f32 to vector<2x32xf32>
    %113 = arith.mulf %112, %111 : vector<2x32xf32>
    %cst_26 = arith.constant 1.000000e+00 : f32
    %114 = vector.broadcast %cst_26 : f32 to vector<2x32xf32>
    %115 = arith.subf %113, %114 : vector<2x32xf32>
    %116 = vector.extract_strided_slice %108 {offsets = [0, 96], sizes = [2, 32], strides = [1, 1]} : vector<2x128xf32> to vector<2x32xf32>
    %117 = arith.mulf %110, %97 : vector<2x32xf32>
    %118 = arith.mulf %109, %115 : vector<2x32xf32>
    %119 = arith.addf %117, %118 : vector<2x32xf32>
    %120 = math.tanh %119 : vector<2x32xf32>
    %121 = arith.mulf %116, %120 : vector<2x32xf32>
    %122 = vector.extract_strided_slice %9 {offsets = [10, 0], sizes = [2, 128], strides = [1, 1]} : vector<16x128xf32> to vector<2x128xf32>
    %123 = arith.truncf %121 : vector<2x32xf32> to vector<2x32xbf16>
    %cst_27 = arith.constant dense<0.000000e+00> : vector<2x128xf32>
    %124 = tpu.matmul %123, %3, %cst_27 {dimension_numbers = #tpu.dot_dimension_numbers<[1], [0], [0], [1], [0, 0, 1, 1], [], []>} : vector<2x32xbf16>, vector<32x128xbf16>, vector<2x128xf32> -> vector<2x128xf32>
    %125 = arith.addf %122, %124 : vector<2x128xf32>
    %126 = arith.negf %125 : vector<2x128xf32>
    %127 = math.exp %126 : vector<2x128xf32>
    %cst_28 = arith.constant 1.000000e+00 : f32
    %128 = vector.broadcast %cst_28 : f32 to vector<2x128xf32>
    %129 = arith.addf %128, %127 : vector<2x128xf32>
    %130 = arith.divf %128, %129 : vector<2x128xf32>
    %131 = vector.extract_strided_slice %130 {offsets = [0, 0], sizes = [2, 32], strides = [1, 1]} : vector<2x128xf32> to vector<2x32xf32>
    %132 = vector.extract_strided_slice %130 {offsets = [0, 32], sizes = [2, 32], strides = [1, 1]} : vector<2x128xf32> to vector<2x32xf32>
    %133 = vector.extract_strided_slice %130 {offsets = [0, 64], sizes = [2, 32], strides = [1, 1]} : vector<2x128xf32> to vector<2x32xf32>
    %cst_29 = arith.constant 2.000000e+00 : f32
    %134 = vector.broadcast %cst_29 : f32 to vector<2x32xf32>
    %135 = arith.mulf %134, %133 : vector<2x32xf32>
    %cst_30 = arith.constant 1.000000e+00 : f32
    %136 = vector.broadcast %cst_30 : f32 to vector<2x32xf32>
    %137 = arith.subf %135, %136 : vector<2x32xf32>
    %138 = vector.extract_strided_slice %130 {offsets = [0, 96], sizes = [2, 32], strides = [1, 1]} : vector<2x128xf32> to vector<2x32xf32>
    %139 = arith.mulf %132, %119 : vector<2x32xf32>
    %140 = arith.mulf %131, %137 : vector<2x32xf32>
    %141 = arith.addf %139, %140 : vector<2x32xf32>
    %142 = math.tanh %141 : vector<2x32xf32>
    %143 = arith.mulf %138, %142 : vector<2x32xf32>
    %144 = vector.extract_strided_slice %9 {offsets = [12, 0], sizes = [2, 128], strides = [1, 1]} : vector<16x128xf32> to vector<2x128xf32>
    %145 = arith.truncf %143 : vector<2x32xf32> to vector<2x32xbf16>
    %cst_31 = arith.constant dense<0.000000e+00> : vector<2x128xf32>
    %146 = tpu.matmul %145, %3, %cst_31 {dimension_numbers = #tpu.dot_dimension_numbers<[1], [0], [0], [1], [0, 0, 1, 1], [], []>} : vector<2x32xbf16>, vector<32x128xbf16>, vector<2x128xf32> -> vector<2x128xf32>
    %147 = arith.addf %144, %146 : vector<2x128xf32>
    %148 = arith.negf %147 : vector<2x128xf32>
    %149 = math.exp %148 : vector<2x128xf32>
    %cst_32 = arith.constant 1.000000e+00 : f32
    %150 = vector.broadcast %cst_32 : f32 to vector<2x128xf32>
    %151 = arith.addf %150, %149 : vector<2x128xf32>
    %152 = arith.divf %150, %151 : vector<2x128xf32>
    %153 = vector.extract_strided_slice %152 {offsets = [0, 0], sizes = [2, 32], strides = [1, 1]} : vector<2x128xf32> to vector<2x32xf32>
    %154 = vector.extract_strided_slice %152 {offsets = [0, 32], sizes = [2, 32], strides = [1, 1]} : vector<2x128xf32> to vector<2x32xf32>
    %155 = vector.extract_strided_slice %152 {offsets = [0, 64], sizes = [2, 32], strides = [1, 1]} : vector<2x128xf32> to vector<2x32xf32>
    %cst_33 = arith.constant 2.000000e+00 : f32
    %156 = vector.broadcast %cst_33 : f32 to vector<2x32xf32>
    %157 = arith.mulf %156, %155 : vector<2x32xf32>
    %cst_34 = arith.constant 1.000000e+00 : f32
    %158 = vector.broadcast %cst_34 : f32 to vector<2x32xf32>
    %159 = arith.subf %157, %158 : vector<2x32xf32>
    %160 = vector.extract_strided_slice %152 {offsets = [0, 96], sizes = [2, 32], strides = [1, 1]} : vector<2x128xf32> to vector<2x32xf32>
    %161 = arith.mulf %154, %141 : vector<2x32xf32>
    %162 = arith.mulf %153, %159 : vector<2x32xf32>
    %163 = arith.addf %161, %162 : vector<2x32xf32>
    %164 = math.tanh %163 : vector<2x32xf32>
    %165 = arith.mulf %160, %164 : vector<2x32xf32>
    %166 = vector.extract_strided_slice %9 {offsets = [14, 0], sizes = [2, 128], strides = [1, 1]} : vector<16x128xf32> to vector<2x128xf32>
    %167 = arith.truncf %165 : vector<2x32xf32> to vector<2x32xbf16>
    %cst_35 = arith.constant dense<0.000000e+00> : vector<2x128xf32>
    %168 = tpu.matmul %167, %3, %cst_35 {dimension_numbers = #tpu.dot_dimension_numbers<[1], [0], [0], [1], [0, 0, 1, 1], [], []>} : vector<2x32xbf16>, vector<32x128xbf16>, vector<2x128xf32> -> vector<2x128xf32>
    %169 = arith.addf %166, %168 : vector<2x128xf32>
    %170 = arith.negf %169 : vector<2x128xf32>
    %171 = math.exp %170 : vector<2x128xf32>
    %cst_36 = arith.constant 1.000000e+00 : f32
    %172 = vector.broadcast %cst_36 : f32 to vector<2x128xf32>
    %173 = arith.addf %172, %171 : vector<2x128xf32>
    %174 = arith.divf %172, %173 : vector<2x128xf32>
    %175 = vector.extract_strided_slice %174 {offsets = [0, 0], sizes = [2, 32], strides = [1, 1]} : vector<2x128xf32> to vector<2x32xf32>
    %176 = vector.extract_strided_slice %174 {offsets = [0, 32], sizes = [2, 32], strides = [1, 1]} : vector<2x128xf32> to vector<2x32xf32>
    %177 = vector.extract_strided_slice %174 {offsets = [0, 64], sizes = [2, 32], strides = [1, 1]} : vector<2x128xf32> to vector<2x32xf32>
    %cst_37 = arith.constant 2.000000e+00 : f32
    %178 = vector.broadcast %cst_37 : f32 to vector<2x32xf32>
    %179 = arith.mulf %178, %177 : vector<2x32xf32>
    %cst_38 = arith.constant 1.000000e+00 : f32
    %180 = vector.broadcast %cst_38 : f32 to vector<2x32xf32>
    %181 = arith.subf %179, %180 : vector<2x32xf32>
    %182 = vector.extract_strided_slice %174 {offsets = [0, 96], sizes = [2, 32], strides = [1, 1]} : vector<2x128xf32> to vector<2x32xf32>
    %183 = arith.mulf %176, %163 : vector<2x32xf32>
    %184 = arith.mulf %175, %181 : vector<2x32xf32>
    %185 = arith.addf %183, %184 : vector<2x32xf32>
    %186 = math.tanh %185 : vector<2x32xf32>
    %187 = arith.mulf %182, %186 : vector<2x32xf32>
    %188 = tpu.concatenate %33, %55, %77, %99, %121, %143, %165, %187 in 0 : vector<2x32xf32>, vector<2x32xf32>, vector<2x32xf32>, vector<2x32xf32>, vector<2x32xf32>, vector<2x32xf32>, vector<2x32xf32>, vector<2x32xf32> -> vector<16x32xf32>
    %c40 = arith.constant 40 : index
    %c0_39 = arith.constant 0 : index
    %189 = vector.load %arg1[%c40, %c0_39] : memref<136x128xf32, #tpu.memory_space<vmem>>, vector<32x128xf32>
    %190 = arith.truncf %189 : vector<32x128xf32> to vector<32x128xbf16>
    %c112 = arith.constant 112 : index
    %c0_40 = arith.constant 0 : index
    %191 = vector.load %arg1[%c112, %c0_40] : memref<136x128xf32, #tpu.memory_space<vmem>>, vector<1x128xf32>
    %c120 = arith.constant 120 : index
    %c0_41 = arith.constant 0 : index
    %192 = vector.load %arg1[%c120, %c0_41] : memref<136x128xf32, #tpu.memory_space<vmem>>, vector<1x128xf32>
    %c72 = arith.constant 72 : index
    %c0_42 = arith.constant 0 : index
    %193 = vector.load %arg1[%c72, %c0_42] : memref<136x128xf32, #tpu.memory_space<vmem>>, vector<32x128xf32>
    %194 = arith.truncf %193 : vector<32x128xf32> to vector<32x128xbf16>
    %c128 = arith.constant 128 : index
    %c0_43 = arith.constant 0 : index
    %195 = vector.load %arg1[%c128, %c0_43] : memref<136x128xf32, #tpu.memory_space<vmem>>, vector<1x128xf32>
    %196 = arith.truncf %188 : vector<16x32xf32> to vector<16x32xbf16>
    %cst_44 = arith.constant dense<0.000000e+00> : vector<16x128xf32>
    %197 = tpu.matmul %196, %190, %cst_44 {dimension_numbers = #tpu.dot_dimension_numbers<[1], [0], [0], [1], [0, 0, 1, 1], [], []>} : vector<16x32xbf16>, vector<32x128xbf16>, vector<16x128xf32> -> vector<16x128xf32>
    %198 = vector.broadcast %191 : vector<1x128xf32> to vector<16x128xf32>
    %199 = arith.addf %197, %198 : vector<16x128xf32>
    %200 = math.tanh %199 : vector<16x128xf32>
    %201 = vector.broadcast %192 : vector<1x128xf32> to vector<16x128xf32>
    %202 = arith.mulf %200, %201 : vector<16x128xf32>
    %cst_45 = arith.constant dense<0.000000e+00> : vector<16xf32>
    %203 = vector.multi_reduction <add>, %202, %cst_45 [1] : vector<16x128xf32> to vector<16xf32>
    %204 = vector.shape_cast %203 : vector<16xf32> to vector<16x1xf32>
    %205 = vector.shape_cast %204 : vector<16x1xf32> to vector<8x2x1xf32>
    %cst_46 = arith.constant dense<0xFF800000> : vector<2x1xf32>
    %206 = vector.multi_reduction <maximumf>, %205, %cst_46 [0] : vector<8x2x1xf32> to vector<2x1xf32>
    %207 = vector.shape_cast %206 : vector<2x1xf32> to vector<1x2x1xf32>
    %208 = vector.broadcast %207 : vector<1x2x1xf32> to vector<8x2x1xf32>
    %209 = arith.subf %205, %208 : vector<8x2x1xf32>
    %210 = math.exp %209 : vector<8x2x1xf32>
    %cst_47 = arith.constant dense<0.000000e+00> : vector<2x1xf32>
    %211 = vector.multi_reduction <add>, %210, %cst_47 [0] : vector<8x2x1xf32> to vector<2x1xf32>
    %212 = vector.shape_cast %210 : vector<8x2x1xf32> to vector<16x1xf32>
    %213 = vector.broadcast %212 : vector<16x1xf32> to vector<16x32xf32>
    %214 = arith.mulf %188, %213 : vector<16x32xf32>
    %215 = vector.shape_cast %214 : vector<16x32xf32> to vector<8x2x32xf32>
    %cst_48 = arith.constant dense<0.000000e+00> : vector<2x32xf32>
    %216 = vector.multi_reduction <add>, %215, %cst_48 [0] : vector<8x2x32xf32> to vector<2x32xf32>
    %217 = vector.broadcast %211 : vector<2x1xf32> to vector<2x32xf32>
    %218 = arith.divf %216, %217 : vector<2x32xf32>
    %219 = arith.truncf %218 : vector<2x32xf32> to vector<2x32xbf16>
    %cst_49 = arith.constant dense<0.000000e+00> : vector<2x128xf32>
    %220 = tpu.matmul %219, %194, %cst_49 {dimension_numbers = #tpu.dot_dimension_numbers<[1], [0], [0], [1], [0, 0, 1, 1], [], []>} : vector<2x32xbf16>, vector<32x128xbf16>, vector<2x128xf32> -> vector<2x128xf32>
    %221 = vector.broadcast %195 : vector<1x128xf32> to vector<2x128xf32>
    %222 = arith.addf %220, %221 : vector<2x128xf32>
    %223 = arith.negf %222 : vector<2x128xf32>
    %224 = math.exp %223 : vector<2x128xf32>
    %cst_50 = arith.constant 1.000000e+00 : f32
    %225 = vector.broadcast %cst_50 : f32 to vector<2x128xf32>
    %226 = arith.addf %225, %224 : vector<2x128xf32>
    %227 = arith.divf %225, %226 : vector<2x128xf32>
    %c0_51 = arith.constant 0 : index
    %c0_52 = arith.constant 0 : index
    %228 = vector.load %arg2[%c0_51, %c0_52] : memref<2x128xf32, #tpu.memory_space<vmem>>, vector<2x128xf32>
    tpu.vector_store %arg2[%c0_51, %c0_52], %227 {strides = array<i32>} : memref<2x128xf32, #tpu.memory_space<vmem>>, vector<2x128xf32>,
    return
  }
}

</mosaic_0001>

<bundles_post_ra>
// kernel: attention_lstm_forward.1
= control target key start
LH: loop header
LB: loop body
LE: loop exit
PB: predicated region body
PF: predicated region fallthrough
CT: control target
= control target key end

     0   :  { %7 = vsyncpa [#allocation3], 0  ;;  %s1162_s0 = inlined_call_operand.vmem [shape: f32[16,8], index: 0, kind: input, shape index: {}]   ;;  %s1163_s1 = inlined_call_operand.hbm [shape: f32[136,128], index: 1, kind: input, shape index: {}]   ;;  %s1164_s2 = inlined_call_operand.hbm [shape: f32[2,128], index: 2, kind: output, shape index: {}]  }
   0x1   :  { %8 = vsyncpa [#allocation4], 0  ;;  %s15_s11 = sshll.u32 %s1163_s1, 4  ;;  %s1024_s12 = smov [#allocation2]   ;;  %s16_s11 = int_to_ptr.hbm [resolvable:$true] %s15_s11 }
   0x2   :  { %s17_s13 = sshll.u32 %s1024_s12, 4  ;;  %s1025_s14 = smov 128   ;;  %s18_s13 = int_to_ptr.vmem [resolvable:$true] %s17_s13 }
   0x3   :  { %s1026_s15 = smov 8  }
   0x4   :  { %23 = dma.hbm_to_vmem [thread:$0]  %s16_s11, 2176, %s18_s13, [#allocation3], %s1025_s14, %s1025_s14, %s1026_s15  }
   0x5   :  { %1020 = dma.done.wait [#allocation3], 2176  }
   0x6   :  { %1021 = vsyncadd [#allocation3], 4294965120  ;;  %v33_v0 = vld [vmem:[#allocation2 + $0x18] sm:$0xff]  ;;  %v34_v1 = vld [vmem:[#allocation2 + $0x20] sm:$0xff]  ;;  %vm46_vm0 = vcmask 1043456   ;;  %vm42_vm1 = vcmask 64512  }
   0x7   :  { %v29_v2 = vld [vmem:[#allocation2] sm:$0xff]  ;;  %v36_v3 = vpack.c.bf16 %v34_v1, %v33_v0  ;;  %v38_v5 = vld [vmem:[%s1162_s0] sm:$0xff]  ;;  %v31_v7 = vld [vmem:[#allocation2 + $0x8] sm:$0xff]  ;;  %v1027_v12 = vmov 0   ;;  %s1029_s19 = smov 32   ;;  %vm64_vm6 = vcmask 261120  }
   0x8   :  { %v30_v4 = vpack.c.bf16 %v29_v2, %v29_v2  ;;  %v39_v6 = vld [vmem:[%s1162_s0 + $0x8] sm:$0xff]  ;;  %v32_v8 = vld [vmem:[#allocation2 + $0x10] sm:$0xff]  ;;  %v1061_v13 = vld [vmem:[#allocation2 + $0x68] ss:$0 sm:$0xff]  ;;  %s1028_s0 = smov 64   ;;  %vm577_vm15 = vcmask 1041408  }
   0x9   :  { %74 = vmatpush.bf16.msra.mxu1 %v36_v3  ;;  %v40_v10 = vpack.c.bf16 %v39_v6, %v38_v5  ;;  %v35_v11 = vpack.c.bf16 %v32_v8, %v31_v7  ;;  %133 = vmatpush.bf16.msra.mxu2 %v36_v3  ;;  %s1034_s20 = smov 96   ;;  %s1035_s21 = smov [#allocation5]  }
   0xa   :  { %v48_v9 = vsel %vm46_vm0, %v30_v4, 0  ;;  %199 = vmatpush.bf16.msra.mxu3 %v36_v3  ;;  %s843_s22 = sshll.u32 %s1035_s21, 4  ;;  %s845_s25 = sshll.u32 %s1164_s2, 4  ;;  %s844_s22 = int_to_ptr.vmem [resolvable:$true] %s843_s22  ;;  %s846_s25 = int_to_ptr.hbm [resolvable:$true] %s845_s25 }
   0xb   :  { %57 = vmatpush.bf16.msra.mxu0 %v48_v9 }
   0xd   :  { %75 = vmatpush.bf16.msra.mxu1 %v35_v11  ;;  %134 = vmatpush.bf16.msra.mxu2 %v35_v11 }
   0xe   :  { %855 = vmatmul.msk.bf16.vlgmr.msra.gmra.mxu0 %vm42_vm1, %v40_v10  ;;  %200 = vmatpush.bf16.msra.mxu3 %v35_v11 }
   0xf   :  { %265 = vmatpush.bf16.msrb.mxu0 %v36_v3 }
  0x10   :  { %76 = vmatmul.bf16.vlgmr.msra.gmra.mxu1 %v1027_v12 }
  0x11   :  { %331 = vmatpush.bf16.msrb.mxu1 %v36_v3  ;;  %393 = vmatpush.bf16.msrb.mxu2 %v36_v3 }
  0x12   :  { %459 = vmatpush.bf16.msrb.mxu3 %v36_v3 }
  0x13   :  { %266 = vmatpush.bf16.msrb.mxu0 %v35_v11 }
  0x15   :  { %332 = vmatpush.bf16.msrb.mxu1 %v35_v11  ;;  %394 = vmatpush.bf16.msrb.mxu2 %v35_v11 }
  0x16   :  { %460 = vmatpush.bf16.msrb.mxu3 %v35_v11 }
  0x17   :  { %525 = vmatpush.bf16.msra.mxu0 %v36_v3 }
  0x1b   :  { %526 = vmatpush.bf16.msra.mxu0 %v35_v11 }
  0x8b   :  { %v59_v14 = vpop.f32.mrf.mxu0 }
  0x8c   :  { %v1064_v15 = vadd.f32 %v1061_v13, %v59_v14 }
  0x8d   :  { %v77_v16 = vpop.f32.mrf.mxu1 }
  0x8e   :  { %v81_v17 = vadd.f32 %v77_v16, %v1064_v15 }
  0x90   :  { %v856_v18 = vmul.f32 -1.442695, %v81_v17 }
  0x92   :  { %898 = vpow2.f32 %v856_v18 }
  0x95   :  { %v79_v19 = vpop.f32.mrf.mxu1 }
  0x98   :  { %v899_v20 = vpop.eup %898 }
  0x99   :  { %v85_v21 = vadd.f32 1.0, %v899_v20 }
  0x9b   :  { %900 = vrcp.f32 %v85_v21  ;;  %v97_v25 = vand.u32 2147483648, %v85_v21  ;;  %v95_v27 = vand.u32 2147483647, %v85_v21  ;;  %vm91_vm3 = vweird.f32 %v85_v21 }
  0x9d   :  { %v98_v29 = vor.u32 1.1754944e-38, %v97_v25  ;;  %vm96_vm5 = vcmp.eq.f32.partialorder %v95_v27, 8.507059e+37 }
  0xa1   :  { %v901_v22 = vpop.eup %900 }
  0xa2   :  { %v87_v23 = vmul.f32 %v901_v22, %v85_v21  ;;  %vm92_vm2 = vweird.f32 %v901_v22 }
  0xa3   :  { %vm93_vm4 = vmor %vm91_vm3, %vm92_vm2 }
  0xa4   :  { %v88_v24 = vsub.f32 1.0, %v87_v23 }
  0xa6   :  { %v89_v26 = vmul.f32 %v901_v22, %v88_v24 }
  0xa8   :  { %v90_v28 = vadd.f32 %v901_v22, %v89_v26 }
  0xaa   :  { %v94_v30 = vsel %vm93_vm4, %v901_v22, %v90_v28 }
  0xab   :  { %v99_v31 = vsel %vm96_vm5, %v98_v29, %v94_v30  ;;  %vm580_vm5 = vcmask 1045504  }
  0xac   :  { %v101_v32 = vmul.f32 2.0, %v99_v31  ;;  %v103_v36 = vmul.f32 0.0, %v99_v31 }
  0xae   :  { %v857_v33 = vadd.f32 -1.0, %v101_v32 }
  0xb0   :  { %105 = vrot.lane.b32.xlu0 %v857_v33, %s1028_s0 }
 0x122   :  { %v106_v34 = vpop.permute.xlu0 %105 }
 0x123   :  { %v108_v35 = vmul.f32 %v106_v34, %v99_v31 }
 0x125   :  { %110 = vrot.lane.b32.xlu0 %v108_v35, %s1029_s19 }
 0x197   :  { %v111_v37 = vpop.permute.xlu0 %110 }
 0x198   :  { %v113_v38 = vadd.f32 %v111_v37, %v103_v36 }
 0x19a   :  { %902 = vtanh.f32 %v113_v38  ;;  %v166_v1 = vrot.slane %v113_v38, 6 }
 0x1a0   :  { %v903_v39 = vpop.eup %902 }
 0x1a1   :  { %116 = vrot.lane.b32.xlu1 %v903_v39, %s1028_s0 }
 0x213   :  { %v117_v40 = vpop.permute.xlu1 %116 }
 0x214   :  { %v1070_v41 = vmul.f32 %v117_v40, %v99_v31 }
 0x216   :  { %v120_v42 = vpack.c.bf16 %v1070_v41, %v1070_v41 }
 0x218   :  { %122 = vrot.lane.b32.xlu1 %v120_v42, %s1029_s19 }
 0x28a   :  { %v123_v43 = vpop.permute.xlu1 %122 }
 0x28b   :  { %858 = vmatmul.msk.bf16.vlgmr.msra.gmra.mxu2 %vm64_vm6, %v123_v43 }
 0x30e   :  { %v136_v44 = vpop.f32.mrf.mxu2 }
 0x30f   :  { %v141_v45 = vrot.slane %v136_v44, 6 }
 0x311   :  { %v143_v46 = vadd.f32 %v141_v45, %v1064_v15 }
 0x313   :  { %v859_v47 = vmul.f32 -1.442695, %v143_v46 }
 0x315   :  { %904 = vpow2.f32 %v859_v47  ;;  %v61_v47 = vpop.f32.mrf.mxu0 }
 0x316   :  { %v138_v48 = vpop.f32.mrf.mxu2 }
 0x31b   :  { %v905_v49 = vpop.eup %904 }
 0x31c   :  { %v147_v50 = vadd.f32 1.0, %v905_v49 }
 0x31e   :  { %906 = vrcp.f32 %v147_v50  ;;  %v159_v54 = vand.u32 2147483648, %v147_v50  ;;  %v157_v56 = vand.u32 2147483647, %v147_v50  ;;  %vm153_vm8 = vweird.f32 %v147_v50 }
 0x320   :  { %v160_v58 = vor.u32 1.1754944e-38, %v159_v54  ;;  %vm158_vm10 = vcmp.eq.f32.partialorder %v157_v56, 8.507059e+37 }
 0x324   :  { %v907_v51 = vpop.eup %906 }
 0x325   :  { %v149_v52 = vmul.f32 %v907_v51, %v147_v50  ;;  %vm154_vm7 = vweird.f32 %v907_v51 }
 0x326   :  { %vm155_vm9 = vmor %vm153_vm8, %vm154_vm7 }
 0x327   :  { %v150_v53 = vsub.f32 1.0, %v149_v52 }
 0x329   :  { %v151_v55 = vmul.f32 %v907_v51, %v150_v53 }
 0x32b   :  { %v152_v57 = vadd.f32 %v907_v51, %v151_v55 }
 0x32d   :  { %v156_v59 = vsel %vm155_vm9, %v907_v51, %v152_v57 }
 0x32e   :  { %v161_v60 = vsel %vm158_vm10, %v160_v58, %v156_v59 }
 0x32f   :  { %v163_v61 = vmul.f32 2.0, %v161_v60  ;;  %v168_v2 = vmul.f32 %v166_v1, %v161_v60 }
 0x331   :  { %v860_v62 = vadd.f32 -1.0, %v163_v61 }
 0x333   :  { %170 = vrot.lane.b32.xlu2 %v860_v62, %s1028_s0 }
 0x38d   :  { %v171_v63 = vpop.permute.xlu2 %170 }
 0x38e   :  { %v173_v0 = vmul.f32 %v171_v63, %v161_v60 }
 0x390   :  { %175 = vrot.lane.b32.xlu2 %v173_v0, %s1029_s19 }
 0x3ea   :  { %v176_v3 = vpop.permute.xlu2 %175 }
 0x3eb   :  { %v178_v4 = vadd.f32 %v176_v3, %v168_v2 }
 0x3ed   :  { %908 = vtanh.f32 %v178_v4  ;;  %v232_v34 = vrot.slane %v178_v4, 6 }
 0x3f3   :  { %v909_v5 = vpop.eup %908 }
 0x3f4   :  { %181 = vrot.lane.b32.xlu0 %v909_v5, %s1028_s0 }
 0x466   :  { %v182_v6 = vpop.permute.xlu0 %181 }
 0x467   :  { %v184_v7 = vmul.f32 %v182_v6, %v161_v60 }
 0x469   :  { %v185_v8 = vpack.c.bf16 %v184_v7, %v184_v7  ;;  %v578_v42 = vsel %vm577_vm15, %v1070_v41, %v184_v7 }
 0x46b   :  { %v187_v9 = vrot.slane %v185_v8, 1 }
 0x46d   :  { %188 = vrot.lane.b32.xlu1 %v187_v9, %s1029_s19 }
 0x4df   :  { %v189_v10 = vpop.permute.xlu1 %188 }
 0x4e0   :  { %861 = vmatmul.msk.bf16.vlgmr.msra.gmra.mxu3 %vm64_vm6, %v189_v10 }
 0x563   :  { %v202_v11 = vpop.f32.mrf.mxu3 }
 0x564   :  { %v207_v12 = vrot.slane %v202_v11, 4 }
 0x566   :  { %v209_v14 = vadd.f32 %v207_v12, %v1064_v15 }
 0x568   :  { %v862_v16 = vmul.f32 -1.442695, %v209_v14 }
 0x56a   :  { %910 = vpow2.f32 %v862_v16  ;;  %v1101_v16 = vadd.f32 %v1061_v13, %v61_v47 }
 0x56b   :  { %v204_v17 = vpop.f32.mrf.mxu3 }
 0x570   :  { %v911_v18 = vpop.eup %910 }
 0x571   :  { %v213_v19 = vadd.f32 1.0, %v911_v18 }
 0x573   :  { %912 = vrcp.f32 %v213_v19  ;;  %v225_v23 = vand.u32 2147483648, %v213_v19  ;;  %v223_v25 = vand.u32 2147483647, %v213_v19  ;;  %vm219_vm12 = vweird.f32 %v213_v19 }
 0x575   :  { %v226_v27 = vor.u32 1.1754944e-38, %v225_v23  ;;  %vm224_vm14 = vcmp.eq.f32.partialorder %v223_v25, 8.507059e+37 }
 0x579   :  { %v913_v20 = vpop.eup %912 }
 0x57a   :  { %v215_v21 = vmul.f32 %v913_v20, %v213_v19  ;;  %vm220_vm11 = vweird.f32 %v913_v20 }
 0x57b   :  { %vm221_vm13 = vmor %vm219_vm12, %vm220_vm11 }
 0x57c   :  { %v216_v22 = vsub.f32 1.0, %v215_v21 }
 0x57e   :  { %v217_v24 = vmul.f32 %v913_v20, %v216_v22 }
 0x580   :  { %v218_v26 = vadd.f32 %v913_v20, %v217_v24 }
 0x582   :  { %v222_v28 = vsel %vm221_vm13, %v913_v20, %v218_v26 }
 0x583   :  { %v227_v29 = vsel %vm224_vm14, %v226_v27, %v222_v28 }
 0x584   :  { %v229_v30 = vmul.f32 2.0, %v227_v29  ;;  %v234_v35 = vmul.f32 %v232_v34, %v227_v29 }
 0x586   :  { %v863_v31 = vadd.f32 -1.0, %v229_v30 }
 0x588   :  { %236 = vrot.lane.b32.xlu2 %v863_v31, %s1028_s0 }
 0x5e2   :  { %v237_v32 = vpop.permute.xlu2 %236 }
 0x5e3   :  { %v239_v33 = vmul.f32 %v237_v32, %v227_v29 }
 0x5e5   :  { %241 = vrot.lane.b32.xlu0 %v239_v33, %s1029_s19 }
 0x657   :  { %v242_v36 = vpop.permute.xlu0 %241 }
 0x658   :  { %v244_v37 = vadd.f32 %v242_v36, %v234_v35 }
 0x65a   :  { %914 = vtanh.f32 %v244_v37  ;;  %v298_v3 = vrot.slane %v244_v37, 6 }
 0x660   :  { %v915_v38 = vpop.eup %914 }
 0x661   :  { %247 = vrot.lane.b32.xlu1 %v915_v38, %s1028_s0 }
 0x6d3   :  { %v248_v39 = vpop.permute.xlu1 %247 }
 0x6d4   :  { %v250_v40 = vmul.f32 %v248_v39, %v227_v29 }
 0x6d6   :  { %v251_v43 = vpack.c.bf16 %v250_v40, %v250_v40  ;;  %v579_v44 = vsel %vm46_vm0, %v578_v42, %v250_v40 }
 0x6d8   :  { %v253_v45 = vrot.slane %v251_v43, 2 }
 0x6da   :  { %254 = vrot.lane.b32.xlu2 %v253_v45, %s1029_s19 }
 0x734   :  { %v255_v46 = vpop.permute.xlu2 %254 }
 0x735   :  { %864 = vmatmul.msk.bf16.vlgmr.msrb.gmra.mxu0 %vm64_vm6, %v255_v46 }
 0x7b2   :  { %v268_v48 = vpop.f32.mrf.mxu0 }
 0x7b3   :  { %v273_v49 = vrot.slane %v268_v48, 2 }
 0x7b5   :  { %v275_v50 = vadd.f32 %v273_v49, %v1064_v15 }
 0x7b7   :  { %v865_v51 = vmul.f32 -1.442695, %v275_v50 }
 0x7b9   :  { %916 = vpow2.f32 %v865_v51 }
 0x7ba   :  { %v270_v52 = vpop.f32.mrf.mxu0 }
 0x7bf   :  { %v917_v53 = vpop.eup %916 }
 0x7c0   :  { %v279_v54 = vadd.f32 1.0, %v917_v53 }
 0x7c2   :  { %918 = vrcp.f32 %v279_v54  ;;  %v291_v57 = vand.u32 2147483648, %v279_v54  ;;  %v289_v59 = vand.u32 2147483647, %v279_v54  ;;  %vm285_vm2 = vweird.f32 %v279_v54 }
 0x7c4   :  { %v292_v61 = vor.u32 1.1754944e-38, %v291_v57  ;;  %vm290_vm4 = vcmp.eq.f32.partialorder %v289_v59, 8.507059e+37 }
 0x7c8   :  { %v919_v41 = vpop.eup %918 }
 0x7c9   :  { %v281_v55 = vmul.f32 %v919_v41, %v279_v54  ;;  %vm286_vm1 = vweird.f32 %v919_v41 }
 0x7ca   :  { %vm287_vm3 = vmor %vm285_vm2, %vm286_vm1 }
 0x7cb   :  { %v282_v56 = vsub.f32 1.0, %v281_v55 }
 0x7cd   :  { %v283_v58 = vmul.f32 %v919_v41, %v282_v56 }
 0x7cf   :  { %v284_v60 = vadd.f32 %v919_v41, %v283_v58 }
 0x7d1   :  { %v288_v62 = vsel %vm287_vm3, %v919_v41, %v284_v60 }
 0x7d2   :  { %v293_v15 = vsel %vm290_vm4, %v292_v61, %v288_v62 }
 0x7d3   :  { %v295_v63 = vmul.f32 2.0, %v293_v15  ;;  %v300_v4 = vmul.f32 %v298_v3, %v293_v15 }
 0x7d5   :  { %v866_v0 = vadd.f32 -1.0, %v295_v63 }
 0x7d7   :  { %302 = vrot.lane.b32.xlu0 %v866_v0, %s1028_s0 }
 0x849   :  { %v303_v1 = vpop.permute.xlu0 %302 }
 0x84a   :  { %v305_v2 = vmul.f32 %v303_v1, %v293_v15 }
 0x84c   :  { %307 = vrot.lane.b32.xlu1 %v305_v2, %s1029_s19 }
 0x8be   :  { %v308_v5 = vpop.permute.xlu1 %307 }
 0x8bf   :  { %v310_v6 = vadd.f32 %v308_v5, %v300_v4 }
 0x8c1   :  { %920 = vtanh.f32 %v310_v6  ;;  %v361_v36 = vrot.slane %v310_v6, 6 }
 0x8c7   :  { %v921_v7 = vpop.eup %920 }
 0x8c8   :  { %313 = vrot.lane.b32.xlu2 %v921_v7, %s1028_s0 }
 0x922   :  { %v314_v8 = vpop.permute.xlu2 %313 }
 0x923   :  { %v316_v9 = vmul.f32 %v314_v8, %v293_v15 }
 0x925   :  { %v317_v10 = vpack.c.bf16 %v316_v9, %v316_v9  ;;  %v1096_v11 = vsel %vm580_vm5, %v579_v44, %v316_v9 }
 0x927   :  { %v319_v12 = vrot.slane %v317_v10, 3 }
 0x929   :  { %320 = vrot.lane.b32.xlu0 %v319_v12, %s1029_s19 }
 0x99b   :  { %v321_v14 = vpop.permute.xlu0 %320 }
 0x99c   :  { %867 = vmatmul.msk.bf16.vlgmr.msrb.gmra.mxu1 %vm64_vm6, %v321_v14 }
 0xa19   :  { %v334_v17 = vpop.f32.mrf.mxu1 }
 0xa1a   :  { %v338_v18 = vadd.f32 %v334_v17, %v1101_v16 }
 0xa1c   :  { %v868_v19 = vmul.f32 -1.442695, %v338_v18 }
 0xa1e   :  { %922 = vpow2.f32 %v868_v19 }
 0xa21   :  { %v336_v20 = vpop.f32.mrf.mxu1 }
 0xa24   :  { %v923_v21 = vpop.eup %922 }
 0xa25   :  { %v342_v22 = vadd.f32 1.0, %v923_v21 }
 0xa27   :  { %924 = vrcp.f32 %v342_v22  ;;  %v354_v26 = vand.u32 2147483648, %v342_v22  ;;  %v352_v28 = vand.u32 2147483647, %v342_v22  ;;  %vm348_vm8 = vweird.f32 %v342_v22 }
 0xa29   :  { %v355_v13 = vor.u32 1.1754944e-38, %v354_v26  ;;  %vm353_vm10 = vcmp.eq.f32.partialorder %v352_v28, 8.507059e+37 }
 0xa2d   :  { %v925_v23 = vpop.eup %924 }
 0xa2e   :  { %v344_v24 = vmul.f32 %v925_v23, %v342_v22  ;;  %vm349_vm7 = vweird.f32 %v925_v23 }
 0xa2f   :  { %vm350_vm9 = vmor %vm348_vm8, %vm349_vm7 }
 0xa30   :  { %v345_v25 = vsub.f32 1.0, %v344_v24 }
 0xa32   :  { %v346_v27 = vmul.f32 %v925_v23, %v345_v25 }
 0xa34   :  { %v347_v29 = vadd.f32 %v925_v23, %v346_v27 }
 0xa36   :  { %v351_v30 = vsel %vm350_vm9, %v925_v23, %v347_v29 }
 0xa37   :  { %v356_v31 = vsel %vm353_vm10, %v355_v13, %v351_v30 }
 0xa38   :  { %v358_v32 = vmul.f32 2.0, %v356_v31  ;;  %v363_v37 = vmul.f32 %v361_v36, %v356_v31 }
 0xa3a   :  { %v869_v33 = vadd.f32 -1.0, %v358_v32 }
 0xa3c   :  { %365 = vrot.lane.b32.xlu1 %v869_v33, %s1028_s0 }
 0xaae   :  { %v366_v34 = vpop.permute.xlu1 %365 }
 0xaaf   :  { %v368_v35 = vmul.f32 %v366_v34, %v356_v31 }
 0xab1   :  { %370 = vrot.lane.b32.xlu2 %v368_v35, %s1029_s19 }
 0xb0b   :  { %v371_v38 = vpop.permute.xlu2 %370 }
 0xb0c   :  { %v373_v39 = vadd.f32 %v371_v38, %v363_v37 }
 0xb0e   :  { %926 = vtanh.f32 %v373_v39  ;;  %v426_v1 = vrot.slane %v373_v39, 6 }
 0xb14   :  { %v927_v40 = vpop.eup %926 }
 0xb15   :  { %376 = vrot.lane.b32.xlu0 %v927_v40, %s1028_s0 }
 0xb87   :  { %v377_v42 = vpop.permute.xlu0 %376 }
 0xb88   :  { %v1107_v43 = vmul.f32 %v377_v42, %v356_v31 }
 0xb8a   :  { %v380_v44 = vpack.c.bf16 %v1107_v43, %v1107_v43 }
 0xb8c   :  { %382 = vrot.lane.b32.xlu1 %v380_v44, %s1029_s19 }
 0xbfe   :  { %v383_v45 = vpop.permute.xlu1 %382 }
 0xbff   :  { %870 = vmatmul.msk.bf16.vlgmr.msrb.gmra.mxu2 %vm64_vm6, %v383_v45 }
 0xc82   :  { %v396_v46 = vpop.f32.mrf.mxu2 }
 0xc83   :  { %v401_v47 = vrot.slane %v396_v46, 6 }
 0xc85   :  { %v403_v48 = vadd.f32 %v401_v47, %v1101_v16 }
 0xc87   :  { %v871_v49 = vmul.f32 -1.442695, %v403_v48 }
 0xc89   :  { %928 = vpow2.f32 %v871_v49 }
 0xc8a   :  { %v398_v50 = vpop.f32.mrf.mxu2 }
 0xc8f   :  { %v929_v51 = vpop.eup %928 }
 0xc90   :  { %v407_v52 = vadd.f32 1.0, %v929_v51 }
 0xc92   :  { %930 = vrcp.f32 %v407_v52  ;;  %v419_v55 = vand.u32 2147483648, %v407_v52  ;;  %v417_v57 = vand.u32 2147483647, %v407_v52  ;;  %vm413_vm12 = vweird.f32 %v407_v52 }
 0xc94   :  { %v420_v59 = vor.u32 1.1754944e-38, %v419_v55  ;;  %vm418_vm14 = vcmp.eq.f32.partialorder %v417_v57, 8.507059e+37 }
 0xc98   :  { %v931_v53 = vpop.eup %930 }
 0xc99   :  { %v409_v54 = vmul.f32 %v931_v53, %v407_v52  ;;  %vm414_vm11 = vweird.f32 %v931_v53 }
 0xc9a   :  { %vm415_vm13 = vmor %vm413_vm12, %vm414_vm11 }
 0xc9b   :  { %v410_v41 = vsub.f32 1.0, %v409_v54 }
 0xc9d   :  { %v411_v56 = vmul.f32 %v931_v53, %v410_v41 }
 0xc9f   :  { %v412_v58 = vadd.f32 %v931_v53, %v411_v56 }
 0xca1   :  { %v416_v60 = vsel %vm415_vm13, %v931_v53, %v412_v58 }
 0xca2   :  { %v421_v61 = vsel %vm418_vm14, %v420_v59, %v416_v60 }
 0xca3   :  { %v423_v62 = vmul.f32 2.0, %v421_v61  ;;  %v428_v2 = vmul.f32 %v426_v1, %v421_v61 }
 0xca5   :  { %v872_v15 = vadd.f32 -1.0, %v423_v62 }
 0xca7   :  { %430 = vrot.lane.b32.xlu2 %v872_v15, %s1028_s0 }
 0xd01   :  { %v431_v63 = vpop.permute.xlu2 %430 }
 0xd02   :  { %v433_v0 = vmul.f32 %v431_v63, %v421_v61 }
 0xd04   :  { %435 = vrot.lane.b32.xlu0 %v433_v0, %s1029_s19 }
 0xd76   :  { %v436_v3 = vpop.permute.xlu0 %435 }
 0xd77   :  { %v438_v4 = vadd.f32 %v436_v3, %v428_v2 }
 0xd79   :  { %932 = vtanh.f32 %v438_v4  ;;  %v492_v35 = vrot.slane %v438_v4, 6 }
 0xd7f   :  { %v933_v5 = vpop.eup %932 }
 0xd80   :  { %441 = vrot.lane.b32.xlu1 %v933_v5, %s1028_s0 }
 0xdf2   :  { %v442_v6 = vpop.permute.xlu1 %441 }
 0xdf3   :  { %v444_v7 = vmul.f32 %v442_v6, %v421_v61 }
 0xdf5   :  { %v445_v8 = vpack.c.bf16 %v444_v7, %v444_v7  ;;  %v582_v44 = vsel %vm577_vm15, %v1107_v43, %v444_v7  ;;  %v587_v7 = vld [vmem:[#allocation2 + $0x38] sm:$0xff] }
 0xdf7   :  { %v447_v9 = vrot.slane %v445_v8, 1  ;;  %v588_v8 = vld [vmem:[#allocation2 + $0x40] sm:$0xff] }
 0xdf9   :  { %448 = vrot.lane.b32.xlu2 %v447_v9, %s1029_s19  ;;  %v585_v9 = vld [vmem:[#allocation2 + $0x28] sm:$0xff] }
 0xe53   :  { %v449_v10 = vpop.permute.xlu2 %448 }
 0xe54   :  { %873 = vmatmul.msk.bf16.vlgmr.msrb.gmra.mxu3 %vm64_vm6, %v449_v10  ;;  %v590_v10 = vpack.c.bf16 %v588_v8, %v587_v7 }
 0xe56   :  { %614 = vmatpush.bf16.msra.mxu1 %v590_v10 }
 0xed7   :  { %v462_v12 = vpop.f32.mrf.mxu3 }
 0xed8   :  { %v467_v14 = vrot.slane %v462_v12, 4  ;;  %v586_v12 = vld [vmem:[#allocation2 + $0x30] sm:$0xff] }
 0xeda   :  { %v469_v17 = vadd.f32 %v467_v14, %v1101_v16  ;;  %v589_v14 = vpack.c.bf16 %v586_v12, %v585_v9 }
 0xedc   :  { %v874_v18 = vmul.f32 -1.442695, %v469_v17  ;;  %615 = vmatpush.bf16.msra.mxu1 %v589_v14 }
 0xede   :  { %934 = vpow2.f32 %v874_v18 }
 0xedf   :  { %v464_v19 = vpop.f32.mrf.mxu3 }
 0xee4   :  { %v935_v20 = vpop.eup %934 }
 0xee5   :  { %v473_v21 = vadd.f32 1.0, %v935_v20 }
 0xee7   :  { %936 = vrcp.f32 %v473_v21  ;;  %v485_v25 = vand.u32 2147483648, %v473_v21  ;;  %v483_v27 = vand.u32 2147483647, %v473_v21  ;;  %vm479_vm2 = vweird.f32 %v473_v21 }
 0xee9   :  { %v486_v29 = vor.u32 1.1754944e-38, %v485_v25  ;;  %vm484_vm4 = vcmp.eq.f32.partialorder %v483_v27, 8.507059e+37  ;;  %v896_v25 = vld [vmem:[#allocation2 + $0x78] ss:$0 sm:$0xff] }
 0xeed   :  { %v937_v22 = vpop.eup %936 }
 0xeee   :  { %v475_v23 = vmul.f32 %v937_v22, %v473_v21  ;;  %vm480_vm1 = vweird.f32 %v937_v22 }
 0xeef   :  { %vm481_vm3 = vmor %vm479_vm2, %vm480_vm1 }
 0xef0   :  { %v476_v24 = vsub.f32 1.0, %v475_v23 }
 0xef2   :  { %v477_v26 = vmul.f32 %v937_v22, %v476_v24 }
 0xef4   :  { %v478_v28 = vadd.f32 %v937_v22, %v477_v26 }
 0xef6   :  { %v482_v13 = vsel %vm481_vm3, %v937_v22, %v478_v28  ;;  %v895_v22 = vld [vmem:[#allocation2 + $0x70] ss:$0 sm:$0xff] }
 0xef7   :  { %v487_v30 = vsel %vm484_vm4, %v486_v29, %v482_v13 }
 0xef8   :  { %v489_v31 = vmul.f32 2.0, %v487_v30  ;;  %v494_v36 = vmul.f32 %v492_v35, %v487_v30  ;;  %v1032_v35 = vmov 1414812756  }
 0xefa   :  { %v875_v32 = vadd.f32 -1.0, %v489_v31  ;;  %v1030_v31 = vmov 269488144  }
 0xefc   :  { %496 = vrot.lane.b32.xlu0 %v875_v32, %s1028_s0  ;;  %v634_v32 = vunpack.c.l.s4 %v1030_v31 }
 0xf6e   :  { %v497_v33 = vpop.permute.xlu0 %496 }
 0xf6f   :  { %v499_v34 = vmul.f32 %v497_v33, %v487_v30  ;;  %v1031_v33 = vmov 842150450  }
 0xf71   :  { %501 = vrot.lane.b32.xlu1 %v499_v34, %s1029_s19  ;;  %v638_v34 = vunpack.c.l.s4 %v1031_v33 }
 0xfe3   :  { %v502_v37 = vpop.permute.xlu1 %501 }
 0xfe4   :  { %v504_v38 = vadd.f32 %v502_v37, %v494_v36  ;;  %v642_v36 = vunpack.c.l.s4 %v1032_v35  ;;  %v1033_v37 = vmov 1987475062  }
 0xfe6   :  { %938 = vtanh.f32 %v504_v38  ;;  %v558_v2 = vrot.slane %v504_v38, 6  ;;  %v646_v38 = vunpack.c.l.s4 %v1033_v37 }
 0xfec   :  { %v939_v39 = vpop.eup %938 }
 0xfed   :  { %507 = vrot.lane.b32.xlu2 %v939_v39, %s1028_s0  ;;  %v635_v39 = vunpack.c.0.s8 %v634_v32 }
0x1047   :  { %v508_v40 = vpop.permute.xlu2 %507 }
0x1048   :  { %v510_v42 = vmul.f32 %v508_v40, %v487_v30  ;;  %v639_v40 = vunpack.c.0.s8 %v638_v34 }
0x104a   :  { %v511_v45 = vpack.c.bf16 %v510_v42, %v510_v42  ;;  %v583_v46 = vsel %vm46_vm0, %v582_v44, %v510_v42  ;;  %v643_v42 = vunpack.c.0.s8 %v642_v36  ;;  %v647_v44 = vunpack.c.0.s8 %v646_v38 }
0x104c   :  { %v513_v47 = vrot.slane %v511_v45, 2 }
0x104e   :  { %514 = vrot.lane.b32.xlu0 %v513_v47, %s1029_s19 }
0x10c0   :  { %v515_v48 = vpop.permute.xlu0 %514 }
0x10c1   :  { %876 = vmatmul.msk.bf16.vlgmr.msra.gmra.mxu0 %vm64_vm6, %v515_v48 }
0x113e   :  { %v528_v49 = vpop.f32.mrf.mxu0 }
0x113f   :  { %v533_v50 = vrot.slane %v528_v49, 2 }
0x1141   :  { %v535_v51 = vadd.f32 %v533_v50, %v1101_v16 }
0x1143   :  { %v877_v52 = vmul.f32 -1.442695, %v535_v51 }
0x1145   :  { %940 = vpow2.f32 %v877_v52 }
0x1146   :  { %v530_v53 = vpop.f32.mrf.mxu0 }
0x114b   :  { %v941_v54 = vpop.eup %940 }
0x114c   :  { %v539_v41 = vadd.f32 1.0, %v941_v54 }
0x114e   :  { %942 = vrcp.f32 %v539_v41  ;;  %v551_v57 = vand.u32 2147483648, %v539_v41  ;;  %v549_v59 = vand.u32 2147483647, %v539_v41  ;;  %vm545_vm7 = vweird.f32 %v539_v41 }
0x1150   :  { %v552_v61 = vor.u32 1.1754944e-38, %v551_v57  ;;  %vm550_vm9 = vcmp.eq.f32.partialorder %v549_v59, 8.507059e+37 }
0x1154   :  { %v943_v43 = vpop.eup %942 }
0x1155   :  { %v541_v55 = vmul.f32 %v943_v43, %v539_v41  ;;  %vm546_vm0 = vweird.f32 %v943_v43 }
0x1156   :  { %vm547_vm8 = vmor %vm545_vm7, %vm546_vm0 }
0x1157   :  { %v542_v56 = vsub.f32 1.0, %v541_v55 }
0x1159   :  { %v543_v58 = vmul.f32 %v943_v43, %v542_v56 }
0x115b   :  { %v544_v60 = vadd.f32 %v943_v43, %v543_v58 }
0x115d   :  { %v548_v62 = vsel %vm547_vm8, %v943_v43, %v544_v60 }
0x115e   :  { %v553_v16 = vsel %vm550_vm9, %v552_v61, %v548_v62 }
0x115f   :  { %v555_v15 = vmul.f32 2.0, %v553_v16  ;;  %v560_v3 = vmul.f32 %v558_v2, %v553_v16 }
0x1161   :  { %v878_v63 = vadd.f32 -1.0, %v555_v15 }
0x1163   :  { %562 = vrot.lane.b32.xlu1 %v878_v63, %s1028_s0 }
0x11d5   :  { %v563_v0 = vpop.permute.xlu1 %562 }
0x11d6   :  { %v565_v1 = vmul.f32 %v563_v0, %v553_v16 }
0x11d8   :  { %567 = vrot.lane.b32.xlu2 %v565_v1, %s1029_s19 }
0x1232   :  { %v568_v4 = vpop.permute.xlu2 %567 }
0x1233   :  { %v570_v5 = vadd.f32 %v568_v4, %v560_v3 }
0x1235   :  { %944 = vtanh.f32 %v570_v5 }
0x123b   :  { %v945_v6 = vpop.eup %944 }
0x123c   :  { %573 = vrot.lane.b32.xlu0 %v945_v6, %s1028_s0 }
0x12ae   :  { %v574_v17 = vpop.permute.xlu0 %573 }
0x12af   :  { %v576_v18 = vmul.f32 %v574_v17, %v553_v16 }
0x12b1   :  { %v1133_v19 = vsel %vm580_vm5, %v583_v46, %v576_v18  ;;  %vm766_vm5 = vcmask 1042176  }
0x12b2   :  { %v600_v20 = vpack.c.bf16 %v1133_v19, %v1096_v11 }
0x12b4   :  { %603 = vrot.lane.b32.xlu1 %v600_v20, %s1029_s19 }
0x1326   :  { %v604_v21 = vpop.permute.xlu1 %603 }
0x1327   :  { %879 = vmatmul.msk.bf16.vlgmr.msra.gmra.mxu1 %vm64_vm6, %v604_v21 }
0x13a4   :  { %v617_v23 = vpop.f32.mrf.mxu1 }
0x13a5   :  { %v618_v24 = vadd.f32 %v895_v22, %v617_v23 }
0x13a7   :  { %946 = vtanh.f32 %v618_v24 }
0x13ac   :  { %v619_v26 = vpop.f32.mrf.mxu1 }
0x13ad   :  { %v947_v27 = vpop.eup %946  ;;  %v620_v28 = vadd.f32 %v895_v22, %v619_v26 }
0x13ae   :  { %v625_v29 = vmul.f32 %v947_v27, %v896_v25 }
0x13af   :  { %948 = vtanh.f32 %v620_v28 }
0x13b0   :  { %627 = vadd.xlane.f32.xlu2 %v625_v29 }
0x13b5   :  { %v949_v13 = vpop.eup %948 }
0x13b6   :  { %v626_v30 = vmul.f32 %v949_v13, %v896_v25 }
0x13b8   :  { %629 = vadd.xlane.f32.xlu0 %v626_v30 }
0x1423   :  { %v628_v45 = vpop.xlane.xlu2 %627 }
0x1424   :  { %v636_v46 = vperm.slane %v628_v45, %v635_v39  ;;  %v640_v47 = vperm.slane %v628_v45, %v639_v40  ;;  %v644_v48 = vperm.slane %v628_v45, %v643_v42  ;;  %v648_v49 = vperm.slane %v628_v45, %v647_v44  ;;  %v594_v45 = vld [vmem:[#allocation2 + $0x50] sm:$0xff] }
0x142b   :  { %v630_v50 = vpop.xlane.xlu0 %629 }
0x142c   :  { %v652_v51 = vperm.slane %v630_v50, %v635_v39  ;;  %v656_v52 = vperm.slane %v630_v50, %v639_v40  ;;  %v660_v53 = vperm.slane %v630_v50, %v643_v42  ;;  %v664_v54 = vperm.slane %v630_v50, %v647_v44  ;;  %v595_v39 = vld [vmem:[#allocation2 + $0x58] sm:$0xff]  ;;  %v596_v40 = vld [vmem:[#allocation2 + $0x60] sm:$0xff]  ;;  %v593_v42 = vld [vmem:[#allocation2 + $0x48] sm:$0xff] }
0x142d   :  { %v598_v44 = vpack.c.bf16 %v596_v40, %v595_v39 }
0x142e   :  { %v673_v41 = vmax.f32 %v636_v46, %v652_v51  ;;  %v674_v43 = vmax.f32 %v640_v47, %v656_v52  ;;  %v675_v55 = vmax.f32 %v644_v48, %v660_v53  ;;  %v676_v56 = vmax.f32 %v648_v49, %v664_v54 }
0x142f   :  { %811 = vmatpush.bf16.msra.mxu2 %v598_v44 }
0x1430   :  { %v677_v57 = vmax.f32 %v673_v41, %v674_v43  ;;  %v678_v58 = vmax.f32 %v675_v55, %v676_v56 }
0x1432   :  { %v679_v59 = vmax.f32 %v677_v57, %v678_v58 }
0x1434   :  { %v680_v60 = vsub.f32 %v636_v46, %v679_v59  ;;  %v681_v61 = vsub.f32 %v640_v47, %v679_v59  ;;  %v682_v62 = vsub.f32 %v644_v48, %v679_v59  ;;  %v683_v16 = vsub.f32 %v648_v49, %v679_v59 }
0x1435   :  { %v684_v15 = vsub.f32 %v652_v51, %v679_v59  ;;  %v685_v63 = vsub.f32 %v656_v52, %v679_v59  ;;  %v686_v0 = vsub.f32 %v660_v53, %v679_v59  ;;  %v687_v4 = vsub.f32 %v664_v54, %v679_v59 }
0x1436   :  { %v688_v1 = vmul.f32 1.442695, %v680_v60  ;;  %v690_v2 = vmul.f32 1.442695, %v681_v61  ;;  %v692_v3 = vmul.f32 1.442695, %v682_v62  ;;  %v597_v46 = vpack.c.bf16 %v594_v45, %v593_v42 }
0x1437   :  { %v694_v5 = vmul.f32 1.442695, %v683_v16  ;;  %v696_v6 = vmul.f32 1.442695, %v684_v15  ;;  %v698_v7 = vmul.f32 1.442695, %v685_v63 }
0x1438   :  { %950 = vpow2.f32 %v688_v1  ;;  %v700_v8 = vmul.f32 1.442695, %v686_v0  ;;  %v702_v9 = vmul.f32 1.442695, %v687_v4  ;;  %812 = vmatpush.bf16.msra.mxu2 %v597_v46 }
0x1439   :  { %952 = vpow2.f32 %v690_v2 }
0x143a   :  { %954 = vpow2.f32 %v692_v3 }
0x143b   :  { %956 = vpow2.f32 %v694_v5 }
0x143c   :  { %958 = vpow2.f32 %v696_v6 }
0x143d   :  { %960 = vpow2.f32 %v698_v7 }
0x143e   :  { %v951_v10 = vpop.eup %950  ;;  %962 = vpow2.f32 %v700_v8 }
0x143f   :  { %v953_v12 = vpop.eup %952  ;;  %964 = vpow2.f32 %v702_v9  ;;  %v704_v14 = vsel %vm577_vm15, %v951_v10, 0.0  ;;  %727 = vst [vmem:[#allocation1] ss:$4 sm:$0xff] %v951_v10 }
0x1440   :  { %v955_v17 = vpop.eup %954  ;;  %v705_v18 = vsel %vm577_vm15, %v953_v12, 0.0  ;;  %729 = vst [vmem:[#allocation1 + $0x1] ss:$4 sm:$0xff] %v953_v12 }
0x1441   :  { %v957_v20 = vpop.eup %956  ;;  %v706_v21 = vadd.f32 %v705_v18, %v704_v14  ;;  %731 = vst [vmem:[#allocation1 + $0x2] ss:$4 sm:$0xff] %v955_v17  ;;  %v707_v23 = vsel %vm577_vm15, %v955_v17, 0.0 }
0x1442   :  { %v959_v22 = vpop.eup %958  ;;  %733 = vst [vmem:[#allocation1 + $0x3] ss:$4 sm:$0xff] %v957_v20  ;;  %v709_v27 = vsel %vm577_vm15, %v957_v20, 0.0  ;;  %v897_v20 = vld [vmem:[#allocation2 + $0x80] ss:$0 sm:$0xff] }
0x1443   :  { %v961_v24 = vpop.eup %960  ;;  %v708_v25 = vadd.f32 %v707_v23, %v706_v21  ;;  %735 = vst [vmem:[#allocation1 + $0x20] ss:$4 sm:$0xff] %v959_v22  ;;  %v711_v13 = vsel %vm577_vm15, %v959_v22, 0.0 }
0x1444   :  { %v963_v26 = vpop.eup %962  ;;  %737 = vst [vmem:[#allocation1 + $0x21] ss:$4 sm:$0xff] %v961_v24  ;;  %v713_v31 = vsel %vm577_vm15, %v961_v24, 0.0 }
0x1445   :  { %v965_v28 = vpop.eup %964  ;;  %v710_v29 = vadd.f32 %v709_v27, %v708_v25  ;;  %739 = vst [vmem:[#allocation1 + $0x22] ss:$4 sm:$0xff] %v963_v26  ;;  %v715_v34 = vsel %vm577_vm15, %v963_v26, 0.0 }
0x1446   :  { %741 = vst [vmem:[#allocation1 + $0x23] ss:$4 sm:$0xff] %v965_v28  ;;  %v717_v36 = vsel %vm577_vm15, %v965_v28, 0.0 }
0x1447   :  { %v712_v30 = vadd.f32 %v711_v13, %v710_v29 }
0x1449   :  { %v714_v32 = vadd.f32 %v713_v31, %v712_v30  ;;  %v742_v33 = vld.sshfl [vmem:[#allocation1] sm:$0xff pattern:$0x73625140] }
0x144a   :  { %744 = vrot.lane.b32.xlu1 %v742_v33, %s1034_s20 }
0x144b   :  { %v716_v35 = vadd.f32 %v715_v34, %v714_v32 }
0x144d   :  { %v718_v37 = vadd.f32 %v717_v36, %v716_v35  ;;  %v743_v38 = vld.sshfl [vmem:[#allocation1 + $0x20] sm:$0xff pattern:$0x73625140] }
0x144f   :  { %966 = vrcp.f32 %v718_v37  ;;  %v793_v3 = vand.u32 2147483648, %v718_v37  ;;  %vm787_vm10 = vweird.f32 %v718_v37  ;;  %v791_v5 = vand.u32 2147483647, %v718_v37 }
0x1451   :  { %v794_v9 = vor.u32 1.1754944e-38, %v793_v3  ;;  %vm792_vm12 = vcmp.eq.f32.partialorder %v791_v5, 8.507059e+37 }
0x1452   :  { %746 = vrot.lane.b32.xlu1 %v743_v38, %s1034_s20 }
0x1455   :  { %v967_v47 = vpop.eup %966 }
0x1456   :  { %v783_v49 = vmul.f32 %v967_v47, %v718_v37  ;;  %vm788_vm15 = vweird.f32 %v967_v47 }
0x1457   :  { %vm789_vm11 = vmor %vm787_vm10, %vm788_vm15 }
0x1458   :  { %v784_v53 = vsub.f32 1.0, %v783_v49 }
0x145a   :  { %v785_v59 = vmul.f32 %v967_v47, %v784_v53 }
0x145c   :  { %v786_v0 = vadd.f32 %v967_v47, %v785_v59 }
0x14bc   :  { %v745_v48 = vpop.permute.xlu1 %744 }
0x14bd   :  { %v750_v50 = vmul.f32 %v745_v48, %v1096_v11 }
0x14bf   :  { %v754_v51 = vrot.slane %v750_v50, 2  ;;  %v755_v52 = vrot.slane %v750_v50, 4  ;;  %v756_v54 = vrot.slane %v750_v50, 6  ;;  %v767_v41 = vsel %vm766_vm5, %v750_v50, 0.0 }
0x14c1   :  { %v768_v43 = vsel %vm766_vm5, %v754_v51, 0.0  ;;  %v770_v56 = vsel %vm766_vm5, %v755_v52, 0.0  ;;  %v772_v60 = vsel %vm766_vm5, %v756_v54, 0.0 }
0x14c2   :  { %v769_v55 = vadd.f32 %v768_v43, %v767_v41 }
0x14c4   :  { %v771_v57 = vadd.f32 %v770_v56, %v769_v55  ;;  %v747_v58 = vpop.permute.xlu1 %746 }
0x14c5   :  { %v751_v61 = vmul.f32 %v747_v58, %v1133_v19  ;;  %v790_v19 = vsel %vm789_vm11, %v967_v47, %v786_v0 }
0x14c6   :  { %v773_v11 = vadd.f32 %v772_v60, %v771_v57  ;;  %v795_v12 = vsel %vm792_vm12, %v794_v9, %v790_v19 }
0x14c7   :  { %v757_v62 = vrot.slane %v751_v61, 2  ;;  %v758_v16 = vrot.slane %v751_v61, 4  ;;  %v774_v15 = vsel %vm766_vm5, %v751_v61, 0.0  ;;  %v759_v1 = vrot.slane %v751_v61, 6 }
0x14c8   :  { %v775_v63 = vadd.f32 %v774_v15, %v773_v11 }
0x14c9   :  { %v776_v2 = vsel %vm766_vm5, %v757_v62, 0.0  ;;  %v778_v6 = vsel %vm766_vm5, %v758_v16, 0.0  ;;  %v780_v8 = vsel %vm766_vm5, %v759_v1, 0.0 }
0x14ca   :  { %v777_v4 = vadd.f32 %v776_v2, %v775_v63 }
0x14cc   :  { %v779_v7 = vadd.f32 %v778_v6, %v777_v4 }
0x14ce   :  { %v781_v10 = vadd.f32 %v780_v8, %v779_v7 }
0x14d0   :  { %v796_v14 = vmul.f32 %v795_v12, %v781_v10 }
0x14d2   :  { %v797_v17 = vpack.c.bf16 %v796_v14, %v796_v14 }
0x14d4   :  { %800 = vrot.lane.b32.xlu1 %v797_v17, %s1029_s19 }
0x1546   :  { %v801_v18 = vpop.permute.xlu1 %800 }
0x1547   :  { %880 = vmatmul.msk.bf16.vlgmr.msra.gmra.mxu2 %vm64_vm6, %v801_v18 }
0x15ca   :  { %v814_v21 = vpop.f32.mrf.mxu2 }
0x15cb   :  { %v815_v22 = vadd.f32 %v897_v20, %v814_v21 }
0x15cd   :  { %v881_v23 = vmul.f32 -1.442695, %v815_v22 }
0x15cf   :  { %968 = vpow2.f32 %v881_v23 }
0x15d2   :  { %v816_v24 = vpop.f32.mrf.mxu2 }
0x15d5   :  { %v969_v25 = vpop.eup %968 }
0x15d6   :  { %v821_v26 = vadd.f32 1.0, %v969_v25 }
0x15d8   :  { %970 = vrcp.f32 %v821_v26  ;;  %v833_v13 = vand.u32 2147483648, %v821_v26  ;;  %v831_v31 = vand.u32 2147483647, %v821_v26  ;;  %vm827_vm6 = vweird.f32 %v821_v26 }
0x15da   :  { %v834_v33 = vor.u32 1.1754944e-38, %v833_v13  ;;  %vm832_vm1 = vcmp.eq.f32.partialorder %v831_v31, 8.507059e+37 }
0x15de   :  { %v971_v27 = vpop.eup %970 }
0x15df   :  { %v823_v28 = vmul.f32 %v971_v27, %v821_v26  ;;  %vm828_vm13 = vweird.f32 %v971_v27 }
0x15e0   :  { %vm829_vm14 = vmor %vm827_vm6, %vm828_vm13 }
0x15e1   :  { %v824_v29 = vsub.f32 1.0, %v823_v28 }
0x15e3   :  { %v825_v30 = vmul.f32 %v971_v27, %v824_v29 }
0x15e5   :  { %v826_v32 = vadd.f32 %v971_v27, %v825_v30 }
0x15e7   :  { %v830_v34 = vsel %vm829_vm14, %v971_v27, %v826_v32 }
0x15e8   :  { %v835_v35 = vsel %vm832_vm1, %v834_v33, %v830_v34 }
0x15e9   :  { %837 = vst [vmem:[#allocation5] sm:$0x3] %v835_v35 }
0x15ea   :  { %848 = dma.vmem_to_hbm [thread:$0]  %s844_s22, 32, %s846_s25, [#allocation4]  }
0x15eb   :  { %1022 = dma.done.wait [#allocation4], 32  }
0x15ec   :  { %1023 = vsyncadd [#allocation4], 4294967264 }
0x15ed   :  { %853 = vsyncpa [#allocation3], 1 }
0x15ee   :  { %854 = vsyncpa [#allocation4], 1 }

</bundles_post_ra>
